<compile_context>
chip_gen: v7x
topology: tpu7x:2x2x1
jax: 0.10.0
libtpu: 0.0.40
codegen_flags: <defaults>
</compile_context>

<pallas_src>
import functools

import jax
import jax.numpy as jnp
from jax import lax
from jax.experimental import pallas as pl
from jax.experimental.pallas import tpu as pltpu


# ---------------------------------------------------------------------------
# Fused image-branch kernel: conv(as im2col matmul)+bias+ReLU -> avg-pool -> fc
# ---------------------------------------------------------------------------
def _image_kernel(p_ref, cw_ref, cb_ref, fw_ref, fb_ref, o_ref, *, B, HW):
    # (B*HW, K) @ (K, Cout) + bias, ReLU
    feat = jnp.dot(p_ref[...], cw_ref[...], preferred_element_type=jnp.float32)
    feat = jnp.maximum(feat + cb_ref[...], 0.0)                       # (B*HW, Cout)
    # global average pool per batch row-block (static slices of the value)
    pooled = jnp.concatenate(
        [jnp.mean(feat[b * HW:(b + 1) * HW, :], axis=0, keepdims=True) for b in range(B)],
        axis=0)                                                       # (B, Cout)
    y = jnp.dot(pooled, fw_ref[...], preferred_element_type=jnp.float32) + fb_ref[...]
    o_ref[...] = y.astype(o_ref.dtype)


def image_branch(patches, conv_w, conv_b, fc_w, fc_b, *, B, HW):
    K = patches.shape[1]
    Cout = conv_w.shape[1]
    E = fc_w.shape[1]
    return pl.pallas_call(
        functools.partial(_image_kernel, B=B, HW=HW),
        out_shape=jax.ShapeDtypeStruct((B, E), jnp.float32),
        grid=(1,),
        in_specs=[
            pl.BlockSpec((B * HW, K), lambda i: (0, 0)),
            pl.BlockSpec((K, Cout), lambda i: (0, 0)),
            pl.BlockSpec((1, Cout), lambda i: (0, 0)),
            pl.BlockSpec((Cout, E), lambda i: (0, 0)),
            pl.BlockSpec((1, E), lambda i: (0, 0)),
        ],
        out_specs=pl.BlockSpec((B, E), lambda i: (0, 0)),
    )(patches, conv_w, conv_b, fc_w, fc_b)


# ---------------------------------------------------------------------------
# Fused text-branch kernel: L GRU layers + final Linear, all in one call
# ---------------------------------------------------------------------------
def _text_kernel(len_ref, x_ref, *args, T, B, H, G, L):
    # args = [wi_0, wh_0, bi_0, bhn_0, ..., wi_{L-1}, wh_{L-1}, bi_{L-1}, bhn_{L-1},
    #         fc_w, fc_b, o_ref]
    w_refs = args[: 4 * L + 2]
    o_ref = args[4 * L + 2]

    # Build a (B, 1) lengths vector from the SMEM scalars (done once).
    row = lax.broadcasted_iota(jnp.int32, (B, 1), 0)
    lens = jnp.zeros((B, 1), jnp.int32)
    for b in range(B):
        lens = jnp.where(row == b, len_ref[b], lens)

    x_in = x_ref[...]                                   # (T*B, Emb) for layer 0
    h = jnp.zeros((B, H), jnp.float32)

    for l in range(L):
        wi = w_refs[4 * l][...]                         # (Ein, G)
        wh = w_refs[4 * l + 1][...]                     # (H,   G)
        bi = w_refs[4 * l + 2][...]                     # (1,   G)  = [bir+bhr, biz+bhz, bin, 0]
        bhn = w_refs[4 * l + 3][...]                    # (1,   H)

        # Hoisted input projection for all timesteps: one lane-dense matmul.
        xg_all = jnp.dot(x_in, wi, preferred_element_type=jnp.float32) + bi   # (T*B, G)

        h = jnp.zeros((B, H), jnp.float32)
        hs = []
        for t in range(T):                              # fully unrolled (T static)
            xg = xg_all[t * B:(t + 1) * B, :]           # (B, G)
            hg = jnp.dot(h, wh, preferred_element_type=jnp.float32)           # (B, G)
            r = jax.nn.sigmoid(xg[:, 0:H] + hg[:, 0:H])
            z = jax.nn.sigmoid(xg[:, H:2 * H] + hg[:, H:2 * H])
            n = jnp.tanh(xg[:, 2 * H:3 * H] + r * (hg[:, 2 * H:3 * H] + bhn))
            h_new = (1.0 - z) * n + z * h
            h = jnp.where(lens > t, h_new, h)           # hold hidden past sequence end
            if l < L - 1:
                hs.append(h)
        if l < L - 1:
            # Inter-layer sequence stays in registers; never touches HBM.
            x_in = jnp.concatenate(hs, axis=0)          # (T*B, H)

    fw = w_refs[4 * L][...]                             # (H, E)
    fb = w_refs[4 * L + 1][...]                         # (1, E)
    y = jnp.dot(h, fw, preferred_element_type=jnp.float32) + fb
    o_ref[...] = y.astype(o_ref.dtype)


def text_branch(x2d, lengths, gru_params, fc_w, fc_b, *, T, B):
    TB, Ein0 = x2d.shape
    H = gru_params[0]["wh"].shape[0]
    G = gru_params[0]["wh"].shape[1]
    E = fc_w.shape[1]
    L = len(gru_params)

    flat = []
    in_specs = [
        pl.BlockSpec(memory_space=pltpu.MemorySpace.SMEM),      # lengths (B,) -> scalar path
        pl.BlockSpec((TB, Ein0), lambda i: (0, 0)),             # packed (T*B, Emb) sequence
    ]
    for lp in gru_params:
        for name in ("wi", "wh", "bi", "bhn"):
            flat.append(lp[name])
            in_specs.append(pl.BlockSpec(lp[name].shape, lambda i: (0, 0)))
    flat += [fc_w, fc_b]
    in_specs += [pl.BlockSpec(fc_w.shape, lambda i: (0, 0)),
                 pl.BlockSpec(fc_b.shape, lambda i: (0, 0))]

    kernel = functools.partial(_text_kernel, T=T, B=B, H=H, G=G, L=L)
    return pl.pallas_call(
        kernel,
        out_shape=jax.ShapeDtypeStruct((B, E), jnp.float32),
        grid=(1,),
        in_specs=in_specs,
        out_specs=pl.BlockSpec((B, E), lambda i: (0, 0)),
    )(lengths, x2d, *flat)


# ---------------------------------------------------------------------------
# Glue (reshapes / im2col / embedding gather / param setup)
# ---------------------------------------------------------------------------
def im2col_3x3(x_nhwc):
    """3x3, stride 1, pad 1 patches: (B,H,W,C) -> (B*H*W, C*9)."""
    B, H, W, C = x_nhwc.shape
    xp = jnp.pad(x_nhwc, ((0, 0), (1, 1), (1, 1), (0, 0)))
    cols = []
    for dy in range(3):
        for dx in range(3):
            cols.append(xp[:, dy:dy + H, dx:dx + W, :])   # (B,H,W,C)
    patches = jnp.stack(cols, axis=-1)                    # (B,H,W,C,9)
    return patches.reshape(B * H * W, C * 9)


def _round_up(x, m):
    return ((x + m - 1) // m) * m


def init_params(key, *, image_encoding_size, vocab_size, embedding_size,
                hidden_size, num_layers, conv_in=3, conv_out=8):
    ks = jax.random.split(key, 8 + num_layers)
    s = 0.1
    H = hidden_size
    G = _round_up(3 * H, 128)                            # lane-dense gate width
    p = {
        # conv weight stored in im2col layout: (C_in*9, C_out)
        "conv_w": s * jax.random.normal(ks[0], (conv_in * 9, conv_out), jnp.float32),
        "conv_b": s * jax.random.normal(ks[1], (1, conv_out), jnp.float32),
        "img_fc_w": s * jax.random.normal(ks[2], (conv_out, image_encoding_size), jnp.float32),
        "img_fc_b": s * jax.random.normal(ks[3], (1, image_encoding_size), jnp.float32),
        "emb": s * jax.random.normal(ks[4], (vocab_size, embedding_size), jnp.float32),
        "txt_fc_w": s * jax.random.normal(ks[5], (H, image_encoding_size), jnp.float32),
        "txt_fc_b": s * jax.random.normal(ks[6], (1, image_encoding_size), jnp.float32),
        "gru": [],
    }
    for l in range(num_layers):
        ein = embedding_size if l == 0 else H
        kk = jax.random.split(ks[8 + l], 12)
        wir, wiz, win = (s * jax.random.normal(kk[i], (ein, H), jnp.float32) for i in range(3))
        whr, whz, whn = (s * jax.random.normal(kk[3 + i], (H, H), jnp.float32) for i in range(3))
        bir, biz, bin_ = (s * jax.random.normal(kk[6 + i], (1, H), jnp.float32) for i in range(3))
        bhr, bhz, bhn = (s * jax.random.normal(kk[9 + i], (1, H), jnp.float32) for i in range(3))
        # Pre-concatenate gate weights (r|z|n) and pad the gate axis to G lanes.
        wi = jnp.pad(jnp.concatenate([wir, wiz, win], axis=1), ((0, 0), (0, G - 3 * H)))
        wh = jnp.pad(jnp.concatenate([whr, whz, whn], axis=1), ((0, 0), (0, G - 3 * H)))
        # Pre-sum combinable biases; b_hn must stay separate (it sits inside the r gate).
        bi = jnp.pad(jnp.concatenate([bir + bhr, biz + bhz, bin_], axis=1),
                     ((0, 0), (0, G - 3 * H)))
        p["gru"].append({"wi": wi, "wh": wh, "bi": bi, "bhn": bhn})
    return p


def basic_align_forward(params, image_nchw, text, lengths):
    # ----- image branch: one fused kernel -----
    x = jnp.transpose(image_nchw, (0, 2, 3, 1))          # NCHW -> NHWC
    B, H, W, _ = x.shape
    patches = im2col_3x3(x)                              # (B*H*W, C_in*9), no extra padding
    image_feature = image_branch(patches, params["conv_w"], params["conv_b"],
                                 params["img_fc_w"], params["img_fc_b"],
                                 B=B, HW=H * W)

    # ----- text branch: embedding gather (glue) + one fused GRU-stack kernel -----
    emb = jnp.take(params["emb"], text, axis=0)          # (B, T, Emb)  (table lookup in XLA)
    Bt, T, Emb = emb.shape
    x2d = jnp.transpose(emb, (1, 0, 2)).reshape(T * Bt, Emb)   # row t*B + b
    text_feature = text_branch(x2d, lengths.astype(jnp.int32), params["gru"],
                               params["txt_fc_w"], params["txt_fc_b"], T=T, B=Bt)
    return image_feature, text_feature


# ---------------------------------------------------------------------------
if __name__ == "__main__":
    B, C_in, Himg, Wimg = 2, 3, 16, 16
    T = 8
    image_encoding_size = 32
    vocab_size = 64
    embedding_size = 32
    hidden_size = 32
    num_layers = 2

    key = jax.random.PRNGKey(0)
    k_img, k_txt, k_par = jax.random.split(key, 3)

    image = jax.random.normal(k_img, (B, C_in, Himg, Wimg), jnp.float32)  # NCHW, like PyTorch
    text = jax.random.randint(k_txt, (B, T), 0, vocab_size, jnp.int32)
    lengths = jnp.array([T, 5], dtype=jnp.int32)

    params = init_params(
        k_par,
        image_encoding_size=image_encoding_size,
        vocab_size=vocab_size,
        embedding_size=embedding_size,
        hidden_size=hidden_size,
        num_layers=num_layers,
    )

    image_feature, text_feature = basic_align_forward(params, image, text, lengths)
    jax.block_until_ready((image_feature, text_feature))

    assert image_feature.shape == (B, image_encoding_size), image_feature.shape
    assert text_feature.shape == (B, image_encoding_size), text_feature.shape
    assert bool(jnp.all(jnp.isfinite(image_feature))) and bool(jnp.all(jnp.isfinite(text_feature)))
    print("KERNEL_OK")
</pallas_src>

<mosaic_0001>
module attributes {stable_mosaic.version = 11 : i64} {
  func.func @_image_kernel(%arg0: i32, %arg1: memref<512x27xf32, #tpu.memory_space<vmem>>, %arg2: memref<27x8xf32, #tpu.memory_space<vmem>>, %arg3: memref<1x8xf32, #tpu.memory_space<vmem>>, %arg4: memref<8x32xf32, #tpu.memory_space<vmem>>, %arg5: memref<1x32xf32, #tpu.memory_space<vmem>>, %arg6: memref<2x32xf32, #tpu.memory_space<vmem>>) attributes {dimension_semantics = [#tpu.dimension_semantics<arbitrary>], iteration_bounds = array<i64: 1>, scalar_prefetch = 0 : i64, scratch_operands = 0 : i64, tpu.core_type = #tpu.core_type<tc>, window_params = [{pipeline_mode = #tpu.pipeline_mode<synchronous>, transform_indices = @transform_0, window_bounds = array<i64: 512, 27>}, {pipeline_mode = #tpu.pipeline_mode<synchronous>, transform_indices = @transform_1, window_bounds = array<i64: 27, 8>}, {pipeline_mode = #tpu.pipeline_mode<synchronous>, transform_indices = @transform_2, window_bounds = array<i64: 1, 8>}, {pipeline_mode = #tpu.pipeline_mode<synchronous>, transform_indices = @transform_3, window_bounds = array<i64: 8, 32>}, {pipeline_mode = #tpu.pipeline_mode<synchronous>, transform_indices = @transform_4, window_bounds = array<i64: 1, 32>}, {pipeline_mode = #tpu.pipeline_mode<synchronous>, transform_indices = @transform_5, window_bounds = array<i64: 2, 32>}]} {
    %c0 = arith.constant 0 : index
    %c0_0 = arith.constant 0 : index
    %0 = vector.load %arg1[%c0, %c0_0] : memref<512x27xf32, #tpu.memory_space<vmem>>, vector<512x27xf32>
    %c0_1 = arith.constant 0 : index
    %c0_2 = arith.constant 0 : index
    %1 = vector.load %arg2[%c0_1, %c0_2] : memref<27x8xf32, #tpu.memory_space<vmem>>, vector<27x8xf32>
    %cst = arith.constant dense<0.000000e+00> : vector<512x8xf32>
    %2 = tpu.matmul %0, %1, %cst {dimension_numbers = #tpu.dot_dimension_numbers<[1], [0], [0], [1], [0, 0, 1, 1], [], []>} : vector<512x27xf32>, vector<27x8xf32>, vector<512x8xf32> -> vector<512x8xf32>
    %c0_3 = arith.constant 0 : index
    %c0_4 = arith.constant 0 : index
    %3 = vector.load %arg3[%c0_3, %c0_4] : memref<1x8xf32, #tpu.memory_space<vmem>>, vector<1x8xf32>
    %4 = vector.broadcast %3 : vector<1x8xf32> to vector<512x8xf32>
    %5 = arith.addf %2, %4 : vector<512x8xf32>
    %cst_5 = arith.constant 0.000000e+00 : f32
    %6 = vector.broadcast %cst_5 : f32 to vector<512x8xf32>
    %7 = arith.maximumf %5, %6 : vector<512x8xf32>
    %8 = vector.extract_strided_slice %7 {offsets = [0, 0], sizes = [256, 8], strides = [1, 1]} : vector<512x8xf32> to vector<256x8xf32>
    %cst_6 = arith.constant dense<0.000000e+00> : vector<8xf32>
    %9 = vector.multi_reduction <add>, %8, %cst_6 [0] : vector<256x8xf32> to vector<8xf32>
    %10 = vector.shape_cast %9 : vector<8xf32> to vector<1x8xf32>
    %cst_7 = arith.constant 2.560000e+02 : f32
    %11 = vector.broadcast %cst_7 : f32 to vector<1x8xf32>
    %12 = arith.divf %10, %11 : vector<1x8xf32>
    %13 = vector.extract_strided_slice %7 {offsets = [256, 0], sizes = [256, 8], strides = [1, 1]} : vector<512x8xf32> to vector<256x8xf32>
    %cst_8 = arith.constant dense<0.000000e+00> : vector<8xf32>
    %14 = vector.multi_reduction <add>, %13, %cst_8 [0] : vector<256x8xf32> to vector<8xf32>
    %15 = vector.shape_cast %14 : vector<8xf32> to vector<1x8xf32>
    %cst_9 = arith.constant 2.560000e+02 : f32
    %16 = vector.broadcast %cst_9 : f32 to vector<1x8xf32>
    %17 = arith.divf %15, %16 : vector<1x8xf32>
    %18 = tpu.concatenate %12, %17 in 0 : vector<1x8xf32>, vector<1x8xf32> -> vector<2x8xf32>
    %c0_10 = arith.constant 0 : index
    %c0_11 = arith.constant 0 : index
    %19 = vector.load %arg4[%c0_10, %c0_11] : memref<8x32xf32, #tpu.memory_space<vmem>>, vector<8x32xf32>
    %cst_12 = arith.constant dense<0.000000e+00> : vector<2x32xf32>
    %20 = tpu.matmul %18, %19, %cst_12 {dimension_numbers = #tpu.dot_dimension_numbers<[1], [0], [0], [1], [0, 0, 1, 1], [], []>} : vector<2x8xf32>, vector<8x32xf32>, vector<2x32xf32> -> vector<2x32xf32>
    %c0_13 = arith.constant 0 : index
    %c0_14 = arith.constant 0 : index
    %21 = vector.load %arg5[%c0_13, %c0_14] : memref<1x32xf32, #tpu.memory_space<vmem>>, vector<1x32xf32>
    %22 = vector.broadcast %21 : vector<1x32xf32> to vector<2x32xf32>
    %23 = arith.addf %20, %22 : vector<2x32xf32>
    %c0_15 = arith.constant 0 : index
    %c0_16 = arith.constant 0 : index
    %24 = vector.load %arg6[%c0_15, %c0_16] : memref<2x32xf32, #tpu.memory_space<vmem>>, vector<2x32xf32>
    tpu.vector_store %arg6[%c0_15, %c0_16], %23 {strides = array<i32>} : memref<2x32xf32, #tpu.memory_space<vmem>>, vector<2x32xf32>,
    return
  }
  func.func @transform_0(%arg0: i32) -> (i32, i32) {
    %c0_i32 = arith.constant 0 : i32
    %c0_i32_0 = arith.constant 0 : i32
    %c0_i32_1 = arith.constant 0 : i32
    return %c0_i32, %c0_i32_0 : i32, i32
  }
  func.func @transform_1(%arg0: i32) -> (i32, i32) {
    %c0_i32 = arith.constant 0 : i32
    %c0_i32_0 = arith.constant 0 : i32
    %c0_i32_1 = arith.constant 0 : i32
    return %c0_i32, %c0_i32_0 : i32, i32
  }
  func.func @transform_2(%arg0: i32) -> (i32, i32) {
    %c0_i32 = arith.constant 0 : i32
    %c0_i32_0 = arith.constant 0 : i32
    %c0_i32_1 = arith.constant 0 : i32
    return %c0_i32, %c0_i32_0 : i32, i32
  }
  func.func @transform_3(%arg0: i32) -> (i32, i32) {
    %c0_i32 = arith.constant 0 : i32
    %c0_i32_0 = arith.constant 0 : i32
    %c0_i32_1 = arith.constant 0 : i32
    return %c0_i32, %c0_i32_0 : i32, i32
  }
  func.func @transform_4(%arg0: i32) -> (i32, i32) {
    %c0_i32 = arith.constant 0 : i32
    %c0_i32_0 = arith.constant 0 : i32
    %c0_i32_1 = arith.constant 0 : i32
    return %c0_i32, %c0_i32_0 : i32, i32
  }
  func.func @transform_5(%arg0: i32) -> (i32, i32) {
    %c0_i32 = arith.constant 0 : i32
    %c0_i32_0 = arith.constant 0 : i32
    %c0_i32_1 = arith.constant 0 : i32
    return %c0_i32, %c0_i32_0 : i32, i32
  }
}

</mosaic_0001>

<bundles_post_ra>
// kernel: tpu_custom_call.1
= control target key start
LH: loop header
LB: loop body
LE: loop exit
PB: predicated region body
PF: predicated region fallthrough
CT: control target
= control target key end

     0   :  { %vm289_vm0 = vcmask 1042432   ;;  %vm96_vm1 = vcmask 220160   ;;  %vm1272_vm2 = vmmov 1   ;;  %s1822_s0 = inlined_call_operand.vmem [shape: f32[512,27], index: 0, kind: input, shape index: {}]   ;;  %s1823_s1 = inlined_call_operand.vmem [shape: f32[27,8], index: 1, kind: input, shape index: {}]   ;;  %s1824_s2 = inlined_call_operand.vmem [shape: f32[1,8], index: 2, kind: input, shape index: {}]   ;;  %s1825_s3 = inlined_call_operand.vmem [shape: f32[8,32], index: 3, kind: input, shape index: {}]   ;;  %s1826_s4 = inlined_call_operand.vmem [shape: f32[1,32], index: 4, kind: input, shape index: {}]   ;;  %s1827_s5 = inlined_call_operand.hbm [shape: f32[2,32], index: 5, kind: output, shape index: {}]  }
   0x1   :  { %v85_v0 = vld [vmem:[%s1823_s1] sm:$0xff]  ;;  %v86_v1 = vld [vmem:[%s1823_s1 + $0x8] sm:$0xff]  ;;  %v87_v2 = vld [vmem:[%s1823_s1 + $0x10] sm:$0xff] }
   0x2   :  { %v1230_v3 = vpack.c.bf16 %v86_v1, %v85_v0  ;;  %v88_v4 = vld [vmem:[%s1823_s1 + $0x18] sm:$0x7]  ;;  %v21_v5 = vld [vmem:[%s1822_s0] sm:$0xff]  ;;  %vm1235_vm3 = vmpackc.low %vm289_vm0, %vm1272_vm2 }
   0x3   :  { %v1234_v6 = vpack.c.bf16 %v88_v4, %v87_v2  ;;  %1129 = vmatprep.mubr.msk.f32.mxu0 %vm96_vm1, %v21_v5  ;;  %v22_v7 = vld [vmem:[%s1822_s0 + $0x8] sm:$0xff]  ;;  %v23_v8 = vld [vmem:[%s1822_s0 + $0x10] sm:$0xff]  ;;  %v24_v9 = vld [vmem:[%s1822_s0 + $0x18] sm:$0xff] }
   0x4   :  { %1231 = vmatprep.subr.bf16.mxu0 %v1230_v3  ;;  %1240 = vmatprep.subr.bf16.mxu1 %v1230_v3  ;;  %v25_v10 = vld [vmem:[%s1822_s0 + $0x20] sm:$0xff]  ;;  %v55_v11 = vld [vmem:[%s1822_s0 + $0x110] sm:$0xff]  ;;  %v56_v12 = vld [vmem:[%s1822_s0 + $0x118] sm:$0xff] }
   0x5   :  { %1233 = vmatpush3.bf16.msra.mxu0 %v1230_v3  ;;  %1242 = vmatpush3.bf16.msra.mxu1 %v1230_v3  ;;  %v57_v13 = vld [vmem:[%s1822_s0 + $0x120] sm:$0xff]  ;;  %v26_v14 = vld [vmem:[%s1822_s0 + $0x28] sm:$0xff]  ;;  %v27_v16 = vld [vmem:[%s1822_s0 + $0x30] sm:$0xff] }
   0x6   :  { %1236 = vmatprep.subr.msk.bf16.mxu0 %vm1235_vm3, %v1234_v6  ;;  %1241 = vmatprep.subr.msk.bf16.mxu1 %vm1235_vm3, %v1234_v6  ;;  %v58_v15 = vld [vmem:[%s1822_s0 + $0x128] sm:$0xff]  ;;  %v59_v17 = vld [vmem:[%s1822_s0 + $0x130] sm:$0xff]  ;;  %v28_v18 = vld [vmem:[%s1822_s0 + $0x38] sm:$0xff] }
   0x7   :  { %1180 = vmatprep.mubr.msk.f32.mxu1 %vm96_vm1, %v55_v11  ;;  %v60_v19 = vld [vmem:[%s1822_s0 + $0x138] sm:$0xff]  ;;  %v29_v20 = vld [vmem:[%s1822_s0 + $0x40] sm:$0xff] }
   0x8   :  { %v61_v21 = vld [vmem:[%s1822_s0 + $0x140] sm:$0xff] }
   0x9   :  { %1239 = vmatpush3.bf16.msk.msra.mxu0 %vm1235_vm3, %v1234_v6  ;;  %1243 = vmatpush3.bf16.msk.msra.mxu1 %vm1235_vm3, %v1234_v6 }
   0xc   :  { %1130 = vmatmul.mubr.msk.f32.vlgmr.msra.gmra.mrb[0].mxu0 %vm96_vm1, %v22_v7  ;;  %1181 = vmatmul.mubr.msk.f32.vlgmr.msra.gmra.mrb[0].mxu1 %vm96_vm1, %v56_v12 }
   0xd   :  { %1132 = vmatprep.mubr.msk.f32.mxu0 %vm96_vm1, %v23_v8  ;;  %1183 = vmatprep.mubr.msk.f32.mxu1 %vm96_vm1, %v57_v13 }
  0x10   :  { %1133 = vmatmul.mubr.msk.f32.gmra.mrb[2].mxu0 %vm96_vm1, %v24_v9  ;;  %1184 = vmatmul.mubr.msk.f32.gmra.mrb[2].mxu1 %vm96_vm1, %v58_v15 }
  0x11   :  { %1135 = vmatprep.mubr.msk.f32.mxu0 %vm96_vm1, %v25_v10  ;;  %1186 = vmatprep.mubr.msk.f32.mxu1 %vm96_vm1, %v59_v17 }
  0x14   :  { %1136 = vmatmul.mubr.msk.f32.gmra.mrb[4].mxu0 %vm96_vm1, %v26_v14  ;;  %1187 = vmatmul.mubr.msk.f32.gmra.mrb[4].mxu1 %vm96_vm1, %v60_v19 }
  0x15   :  { %1138 = vmatprep.mubr.msk.f32.mxu0 %vm96_vm1, %v27_v16 }
  0x18   :  { %1139 = vmatmul.mubr.msk.f32.gmra.mrb[6].mxu0 %vm96_vm1, %v28_v18 }
  0x19   :  { %10 = vsyncpa [#allocation3], 0  ;;  %1141 = vmatprep.mubr.msk.f32.mxu0 %vm96_vm1, %v29_v20  ;;  %v30_v22 = vld [vmem:[%s1822_s0 + $0x48] sm:$0xff]  ;;  %1189 = vmatprep.mubr.msk.f32.mxu1 %vm96_vm1, %v61_v21  ;;  %v31_v24 = vld [vmem:[%s1822_s0 + $0x50] sm:$0xff]  ;;  %v1273_v7 = vmov 0.0   ;;  %vm742_vm4 = vcmask 64512  }
  0x1a   :  { %v62_v23 = vld [vmem:[%s1822_s0 + $0x148] sm:$0xff]  ;;  %v63_v25 = vld [vmem:[%s1822_s0 + $0x150] sm:$0xff]  ;;  %v32_v26 = vld [vmem:[%s1822_s0 + $0x58] sm:$0xff]  ;;  %1225 = vmatprep.subr.mxu1 %v1273_v7  ;;  %vm1274_vm5 = vmmov 0   ;;  %vm884_vm6 = vcmask 1040384   ;;  %vm967_vm7 = vcmask 254976  }
  0x1b   :  { %1190 = vmatmul.mubr.msk.f32.gmra.mrb[6].mxu1 %vm96_vm1, %v62_v23  ;;  %v64_v27 = vld [vmem:[%s1822_s0 + $0x158] sm:$0xff]  ;;  %v33_v28 = vld [vmem:[%s1822_s0 + $0x60] sm:$0xff]  ;;  %v34_v30 = vld [vmem:[%s1822_s0 + $0x68] sm:$0xff] }
  0x1c   :  { %1142 = vmatmul.mubr.msk.f32.gmra.mrb[8].mxu0 %vm96_vm1, %v30_v22  ;;  %1192 = vmatprep.mubr.msk.f32.mxu1 %vm96_vm1, %v63_v25  ;;  %v65_v29 = vld [vmem:[%s1822_s0 + $0x160] sm:$0xff]  ;;  %v66_v31 = vld [vmem:[%s1822_s0 + $0x168] sm:$0xff]  ;;  %v35_v32 = vld [vmem:[%s1822_s0 + $0x70] sm:$0xff] }
  0x1d   :  { %1144 = vmatprep.mubr.msk.f32.mxu0 %vm96_vm1, %v31_v24  ;;  %v67_v33 = vld [vmem:[%s1822_s0 + $0x170] sm:$0xff]  ;;  %v36_v34 = vld [vmem:[%s1822_s0 + $0x78] sm:$0xff]  ;;  %v37_v36 = vld [vmem:[%s1822_s0 + $0x80] sm:$0xff] }
  0x1e   :  { %v68_v35 = vld [vmem:[%s1822_s0 + $0x178] sm:$0xff]  ;;  %v69_v37 = vld [vmem:[%s1822_s0 + $0x180] sm:$0xff]  ;;  %v38_v38 = vld [vmem:[%s1822_s0 + $0x88] sm:$0xff] }
  0x1f   :  { %1193 = vmatmul.mubr.msk.f32.gmra.mrb[8].mxu1 %vm96_vm1, %v64_v27  ;;  %v70_v39 = vld [vmem:[%s1822_s0 + $0x188] sm:$0xff]  ;;  %v39_v40 = vld [vmem:[%s1822_s0 + $0x90] sm:$0xff]  ;;  %v40_v42 = vld [vmem:[%s1822_s0 + $0x98] sm:$0xff] }
  0x20   :  { %1145 = vmatmul.mubr.msk.f32.gmra.mrb[10].mxu0 %vm96_vm1, %v32_v26  ;;  %1195 = vmatprep.mubr.msk.f32.mxu1 %vm96_vm1, %v65_v29  ;;  %v71_v41 = vld [vmem:[%s1822_s0 + $0x190] sm:$0xff]  ;;  %v72_v43 = vld [vmem:[%s1822_s0 + $0x198] sm:$0xff]  ;;  %v41_v44 = vld [vmem:[%s1822_s0 + $0xa0] sm:$0xff] }
  0x21   :  { %1147 = vmatprep.mubr.msk.f32.mxu0 %vm96_vm1, %v33_v28  ;;  %v73_v45 = vld [vmem:[%s1822_s0 + $0x1a0] sm:$0xff]  ;;  %v42_v46 = vld [vmem:[%s1822_s0 + $0xa8] sm:$0xff]  ;;  %v43_v48 = vld [vmem:[%s1822_s0 + $0xb0] sm:$0xff] }
  0x22   :  { %v74_v47 = vld [vmem:[%s1822_s0 + $0x1a8] sm:$0xff]  ;;  %v75_v49 = vld [vmem:[%s1822_s0 + $0x1b0] sm:$0xff]  ;;  %v44_v50 = vld [vmem:[%s1822_s0 + $0xb8] sm:$0xff] }
  0x23   :  { %1196 = vmatmul.mubr.msk.f32.gmra.mrb[10].mxu1 %vm96_vm1, %v66_v31  ;;  %v76_v51 = vld [vmem:[%s1822_s0 + $0x1b8] sm:$0xff]  ;;  %v45_v52 = vld [vmem:[%s1822_s0 + $0xc0] sm:$0xff]  ;;  %v46_v54 = vld [vmem:[%s1822_s0 + $0xc8] sm:$0xff] }
  0x24   :  { %1148 = vmatmul.mubr.msk.f32.gmra.mrb[12].mxu0 %vm96_vm1, %v34_v30  ;;  %1198 = vmatprep.mubr.msk.f32.mxu1 %vm96_vm1, %v67_v33  ;;  %v77_v53 = vld [vmem:[%s1822_s0 + $0x1c0] sm:$0xff]  ;;  %v78_v55 = vld [vmem:[%s1822_s0 + $0x1c8] sm:$0xff]  ;;  %v47_v56 = vld [vmem:[%s1822_s0 + $0xd0] sm:$0xff] }
  0x25   :  { %1150 = vmatprep.mubr.msk.f32.mxu0 %vm96_vm1, %v35_v32  ;;  %v79_v57 = vld [vmem:[%s1822_s0 + $0x1d0] sm:$0xff]  ;;  %v48_v58 = vld [vmem:[%s1822_s0 + $0xd8] sm:$0xff]  ;;  %v49_v60 = vld [vmem:[%s1822_s0 + $0xe0] sm:$0xff] }
  0x26   :  { %v80_v59 = vld [vmem:[%s1822_s0 + $0x1d8] sm:$0xff]  ;;  %v81_v61 = vld [vmem:[%s1822_s0 + $0x1e0] sm:$0xff]  ;;  %v50_v62 = vld [vmem:[%s1822_s0 + $0xe8] sm:$0xff] }
  0x27   :  { %1199 = vmatmul.mubr.msk.f32.gmra.mrb[12].mxu1 %vm96_vm1, %v68_v35  ;;  %v82_v63 = vld [vmem:[%s1822_s0 + $0x1e8] sm:$0xff]  ;;  %v51_v0 = vld [vmem:[%s1822_s0 + $0xf0] sm:$0xff]  ;;  %v52_v2 = vld [vmem:[%s1822_s0 + $0xf8] sm:$0xff] }
  0x28   :  { %1151 = vmatmul.mubr.msk.f32.gmra.mrb[14].mxu0 %vm96_vm1, %v36_v34  ;;  %1201 = vmatprep.mubr.msk.f32.mxu1 %vm96_vm1, %v69_v37  ;;  %v83_v1 = vld [vmem:[%s1822_s0 + $0x1f0] sm:$0xff]  ;;  %v84_v3 = vld [vmem:[%s1822_s0 + $0x1f8] sm:$0xff]  ;;  %v53_v4 = vld [vmem:[%s1822_s0 + $0x100] sm:$0xff] }
  0x29   :  { %1153 = vmatprep.mubr.msk.f32.mxu0 %vm96_vm1, %v37_v36  ;;  %v54_v5 = vld [vmem:[%s1822_s0 + $0x108] sm:$0xff]  ;;  %v886_v6 = vld [vmem:[%s1825_s3] sm:$0xff]  ;;  %s1275_s3 = smov [#allocation2]  }
  0x2a   :  { %1226 = vmatpush3.msra.mxu1 %v886_v6  ;;  %v1581_v8 = vld [vmem:[%s1824_s2] ss:$0 sm:$0xff]  ;;  %s975_s28 = sshll.u32 %s1275_s3, 4  ;;  %s976_s28 = int_to_ptr.vmem [resolvable:$true] %s975_s28 }
  0x2b   :  { %1202 = vmatmul.mubr.msk.f32.gmra.mrb[14].mxu1 %vm96_vm1, %v70_v39  ;;  %s1248_s29 = scalar_lea.vmem %s976_s28, 32  ;;  %p1253_p1 = scmp.lt.s32.totalorder %s976_s28, %s976_s28 }
  0x2c   :  { %1154 = vmatmul.mubr.msk.f32.gmra.mrb[16].mxu0 %vm96_vm1, %v38_v38  ;;  %1204 = vmatprep.mubr.msk.f32.mxu1 %vm96_vm1, %v71_v41  ;;  %p1249_p0 = scmp.ne.s32.totalorder %s976_s28, %s1248_s29  ;;  %p1254_p2 = scmp.lt.s32.totalorder %s1248_s29, %s1248_s29 }
  0x2d   :  { %1156 = vmatprep.mubr.msk.f32.mxu0 %vm96_vm1, %v39_v40 }
  0x2e   :  { %p1255_p3 = por %p1254_p2, %p1253_p1 }
  0x2f   :  { %1205 = vmatmul.mubr.msk.f32.gmra.mrb[16].mxu1 %vm96_vm1, %v72_v43 }
  0x30   :  { %1157 = vmatmul.mubr.msk.f32.gmra.mrb[18].mxu0 %vm96_vm1, %v40_v42  ;;  %1207 = vmatprep.mubr.msk.f32.mxu1 %vm96_vm1, %v73_v45  ;;  %p1256_p4 = pnand %p1255_p3, %p1249_p0 }
  0x31   :  { %1159 = vmatprep.mubr.msk.f32.mxu0 %vm96_vm1, %v41_v44 }
  0x33   :  { %1208 = vmatmul.mubr.msk.f32.gmra.mrb[18].mxu1 %vm96_vm1, %v74_v47 }
  0x34   :  { %1160 = vmatmul.mubr.msk.f32.gmra.mrb[20].mxu0 %vm96_vm1, %v42_v46  ;;  %1210 = vmatprep.mubr.msk.f32.mxu1 %vm96_vm1, %v75_v49 }
  0x35   :  { %1162 = vmatprep.mubr.msk.f32.mxu0 %vm96_vm1, %v43_v48 }
  0x37   :  { %1211 = vmatmul.mubr.msk.f32.gmra.mrb[20].mxu1 %vm96_vm1, %v76_v51 }
  0x38   :  { %1163 = vmatmul.mubr.msk.f32.gmra.mrb[22].mxu0 %vm96_vm1, %v44_v50  ;;  %1213 = vmatprep.mubr.msk.f32.mxu1 %vm96_vm1, %v77_v53 }
  0x39   :  { %1165 = vmatprep.mubr.msk.f32.mxu0 %vm96_vm1, %v45_v52 }
  0x3b   :  { %1214 = vmatmul.mubr.msk.f32.gmra.mrb[22].mxu1 %vm96_vm1, %v78_v55 }
  0x3c   :  { %1166 = vmatmul.mubr.msk.f32.gmra.mrb[24].mxu0 %vm96_vm1, %v46_v54  ;;  %1216 = vmatprep.mubr.msk.f32.mxu1 %vm96_vm1, %v79_v57 }
  0x3d   :  { %1168 = vmatprep.mubr.msk.f32.mxu0 %vm96_vm1, %v47_v56 }
  0x3f   :  { %1217 = vmatmul.mubr.msk.f32.gmra.mrb[24].mxu1 %vm96_vm1, %v80_v59 }
  0x40   :  { %1169 = vmatmul.mubr.msk.f32.gmra.mrb[26].mxu0 %vm96_vm1, %v48_v58  ;;  %1219 = vmatprep.mubr.msk.f32.mxu1 %vm96_vm1, %v81_v61 }
  0x41   :  { %1171 = vmatprep.mubr.msk.f32.mxu0 %vm96_vm1, %v49_v60 }
  0x43   :  { %1220 = vmatmul.mubr.msk.f32.gmra.mrb[26].mxu1 %vm96_vm1, %v82_v63 }
  0x44   :  { %1172 = vmatmul.mubr.msk.f32.gmra.mrb[28].mxu0 %vm96_vm1, %v50_v62  ;;  %1222 = vmatprep.mubr.msk.f32.mxu1 %vm96_vm1, %v83_v1 }
  0x45   :  { %1174 = vmatprep.mubr.msk.f32.mxu0 %vm96_vm1, %v51_v0 }
  0x47   :  { %1223 = vmatmul.mubr.msk.f32.gmra.mrb[28].mxu1 %vm96_vm1, %v84_v3 }
  0x48   :  { %1175 = vmatmul.mubr.msk.f32.gmra.mrb[30].mxu0 %vm96_vm1, %v52_v2  ;;  %1227 = vmatprep.mubr.msk.f32.mxu1 %vm1274_vm5, %v1273_v7 }
  0x49   :  { %1177 = vmatprep.mubr.msk.f32.mxu0 %vm96_vm1, %v53_v4 }
  0x4c   :  { %1178 = vmatmul.mubr.msk.f32.gmra.mrb[32].mxu0 %vm96_vm1, %v54_v5 }
  0xdf   :  { %v1131_v9 = vpop.f32.mrb[0].mxu0  ;;  %v1585_v16 = vpop.f32.mrb[0].mxu1 }
  0xe0   :  { %v365_v10 = vadd.f32 %v1131_v9, %v1581_v8  ;;  %v359_v11 = vpop.f32.mrb[1].mxu0  ;;  %v1589_v20 = vpop.f32.mrb[1].mxu1 }
  0xe1   :  { %v360_v12 = vadd.f32 %v1581_v8, %v359_v11 }
  0xe2   :  { %v679_v13 = vmax.f32 %v365_v10, 0.0 }
  0xe3   :  { %v678_v14 = vmax.f32 %v360_v12, 0.0  ;;  %v1134_v15 = vpop.f32.mrb[2].mxu0  ;;  %v1593_v27 = vpop.f32.mrb[2].mxu1 }
  0xe4   :  { %v744_v17 = vsel %vm742_vm4, %v679_v13, 0.0  ;;  %v375_v18 = vadd.f32 %v1134_v15, %v1581_v8  ;;  %v369_v19 = vpop.f32.mrb[3].mxu0  ;;  %v1596_v30 = vpop.f32.mrb[3].mxu1 }
  0xe5   :  { %v743_v21 = vsel %vm742_vm4, %v678_v14, 0.0  ;;  %v370_v22 = vadd.f32 %v1581_v8, %v369_v19 }
  0xe6   :  { %v745_v23 = vadd.f32 %v744_v17, %v743_v21  ;;  %v681_v24 = vmax.f32 %v375_v18, 0.0 }
  0xe7   :  { %v680_v25 = vmax.f32 %v370_v22, 0.0  ;;  %v1137_v26 = vpop.f32.mrb[4].mxu0  ;;  %v1601_v38 = vpop.f32.mrb[4].mxu1 }
  0xe8   :  { %v385_v28 = vadd.f32 %v1137_v26, %v1581_v8  ;;  %v379_v29 = vpop.f32.mrb[5].mxu0  ;;  %v748_v34 = vsel %vm742_vm4, %v681_v24, 0.0  ;;  %v1604_v42 = vpop.f32.mrb[5].mxu1 }
  0xe9   :  { %v746_v31 = vsel %vm742_vm4, %v680_v25, 0.0  ;;  %v380_v32 = vadd.f32 %v1581_v8, %v379_v29 }
  0xea   :  { %v747_v33 = vadd.f32 %v746_v31, %v745_v23  ;;  %v683_v35 = vmax.f32 %v385_v28, 0.0 }
  0xeb   :  { %v682_v36 = vmax.f32 %v380_v32, 0.0  ;;  %v1140_v37 = vpop.f32.mrb[6].mxu0 }
  0xec   :  { %v749_v39 = vadd.f32 %v748_v34, %v747_v33  ;;  %v395_v40 = vadd.f32 %v1140_v37, %v1581_v8  ;;  %v389_v41 = vpop.f32.mrb[7].mxu0  ;;  %v752_v46 = vsel %vm742_vm4, %v683_v35, 0.0 }
  0xed   :  { %v750_v43 = vsel %vm742_vm4, %v682_v36, 0.0  ;;  %v390_v44 = vadd.f32 %v1581_v8, %v389_v41 }
  0xee   :  { %v751_v45 = vadd.f32 %v750_v43, %v749_v39  ;;  %v685_v47 = vmax.f32 %v395_v40, 0.0  ;;  %v1609_v50 = vpop.f32.mrb[6].mxu1 }
  0xef   :  { %v684_v48 = vmax.f32 %v390_v44, 0.0  ;;  %v1143_v49 = vpop.f32.mrb[8].mxu0  ;;  %v1612_v54 = vpop.f32.mrb[7].mxu1 }
  0xf0   :  { %v753_v51 = vadd.f32 %v752_v46, %v751_v45  ;;  %v405_v52 = vadd.f32 %v1143_v49, %v1581_v8  ;;  %v399_v53 = vpop.f32.mrb[9].mxu0  ;;  %v756_v58 = vsel %vm742_vm4, %v685_v47, 0.0 }
  0xf1   :  { %v754_v55 = vsel %vm742_vm4, %v684_v48, 0.0  ;;  %v400_v56 = vadd.f32 %v1581_v8, %v399_v53 }
  0xf2   :  { %v755_v57 = vadd.f32 %v754_v55, %v753_v51  ;;  %v687_v59 = vmax.f32 %v405_v52, 0.0  ;;  %v1617_v62 = vpop.f32.mrb[8].mxu1 }
  0xf3   :  { %v686_v60 = vmax.f32 %v400_v56, 0.0  ;;  %v1146_v61 = vpop.f32.mrb[10].mxu0  ;;  %v1620_v2 = vpop.f32.mrb[9].mxu1 }
  0xf4   :  { %v757_v63 = vadd.f32 %v756_v58, %v755_v57  ;;  %v415_v0 = vadd.f32 %v1146_v61, %v1581_v8  ;;  %v409_v1 = vpop.f32.mrb[11].mxu0  ;;  %v760_v6 = vsel %vm742_vm4, %v687_v59, 0.0 }
  0xf5   :  { %v758_v3 = vsel %vm742_vm4, %v686_v60, 0.0  ;;  %v410_v4 = vadd.f32 %v1581_v8, %v409_v1 }
  0xf6   :  { %v759_v5 = vadd.f32 %v758_v3, %v757_v63  ;;  %v689_v9 = vmax.f32 %v415_v0, 0.0  ;;  %v1626_v12 = vpop.f32.mrb[10].mxu1 }
  0xf7   :  { %v688_v10 = vmax.f32 %v410_v4, 0.0  ;;  %v1149_v11 = vpop.f32.mrb[12].mxu0  ;;  %v1629_v17 = vpop.f32.mrb[11].mxu1 }
  0xf8   :  { %v761_v13 = vadd.f32 %v760_v6, %v759_v5  ;;  %v425_v14 = vadd.f32 %v1149_v11, %v1581_v8  ;;  %v419_v15 = vpop.f32.mrb[13].mxu0  ;;  %v764_v21 = vsel %vm742_vm4, %v689_v9, 0.0 }
  0xf9   :  { %v762_v7 = vsel %vm742_vm4, %v688_v10, 0.0  ;;  %v420_v18 = vadd.f32 %v1581_v8, %v419_v15 }
  0xfa   :  { %v763_v19 = vadd.f32 %v762_v7, %v761_v13  ;;  %v691_v22 = vmax.f32 %v425_v14, 0.0  ;;  %v1634_v25 = vpop.f32.mrb[12].mxu1 }
  0xfb   :  { %v690_v23 = vmax.f32 %v420_v18, 0.0  ;;  %v1152_v24 = vpop.f32.mrb[14].mxu0  ;;  %v1637_v31 = vpop.f32.mrb[13].mxu1 }
  0xfc   :  { %v765_v26 = vadd.f32 %v764_v21, %v763_v19  ;;  %v435_v28 = vadd.f32 %v1152_v24, %v1581_v8  ;;  %v429_v29 = vpop.f32.mrb[15].mxu0  ;;  %v768_v35 = vsel %vm742_vm4, %v691_v22, 0.0 }
  0xfd   :  { %v766_v32 = vsel %vm742_vm4, %v690_v23, 0.0  ;;  %v430_v33 = vadd.f32 %v1581_v8, %v429_v29 }
  0xfe   :  { %v767_v34 = vadd.f32 %v766_v32, %v765_v26  ;;  %v693_v36 = vmax.f32 %v435_v28, 0.0  ;;  %v1642_v40 = vpop.f32.mrb[14].mxu1 }
  0xff   :  { %v692_v37 = vmax.f32 %v430_v33, 0.0  ;;  %v1155_v39 = vpop.f32.mrb[16].mxu0  ;;  %v1645_v45 = vpop.f32.mrb[15].mxu1 }
 0x100   :  { %v769_v41 = vadd.f32 %v768_v35, %v767_v34  ;;  %v445_v43 = vadd.f32 %v1155_v39, %v1581_v8  ;;  %v439_v44 = vpop.f32.mrb[17].mxu0  ;;  %v772_v49 = vsel %vm742_vm4, %v693_v36, 0.0 }
 0x101   :  { %v770_v46 = vsel %vm742_vm4, %v692_v37, 0.0  ;;  %v440_v47 = vadd.f32 %v1581_v8, %v439_v44 }
 0x102   :  { %v771_v48 = vadd.f32 %v770_v46, %v769_v41  ;;  %v695_v51 = vmax.f32 %v445_v43, 0.0  ;;  %v1650_v55 = vpop.f32.mrb[16].mxu1 }
 0x103   :  { %v694_v52 = vmax.f32 %v440_v47, 0.0  ;;  %v1158_v53 = vpop.f32.mrb[18].mxu0  ;;  %v1653_v59 = vpop.f32.mrb[17].mxu1 }
 0x104   :  { %v773_v56 = vadd.f32 %v772_v49, %v771_v48  ;;  %v455_v57 = vadd.f32 %v1158_v53, %v1581_v8  ;;  %v449_v58 = vpop.f32.mrb[19].mxu0  ;;  %v776_v0 = vsel %vm742_vm4, %v695_v51, 0.0 }
 0x105   :  { %v774_v60 = vsel %vm742_vm4, %v694_v52, 0.0  ;;  %v450_v61 = vadd.f32 %v1581_v8, %v449_v58 }
 0x106   :  { %v775_v63 = vadd.f32 %v774_v60, %v773_v56  ;;  %v697_v1 = vmax.f32 %v455_v57, 0.0  ;;  %v1658_v5 = vpop.f32.mrb[18].mxu1 }
 0x107   :  { %v696_v3 = vmax.f32 %v450_v61, 0.0  ;;  %v1161_v4 = vpop.f32.mrb[20].mxu0  ;;  %v1661_v11 = vpop.f32.mrb[19].mxu1 }
 0x108   :  { %v777_v6 = vadd.f32 %v776_v0, %v775_v63  ;;  %v465_v9 = vadd.f32 %v1161_v4, %v1581_v8  ;;  %v459_v10 = vpop.f32.mrb[21].mxu0  ;;  %v780_v7 = vsel %vm742_vm4, %v697_v1, 0.0 }
 0x109   :  { %v778_v13 = vsel %vm742_vm4, %v696_v3, 0.0  ;;  %v460_v14 = vadd.f32 %v1581_v8, %v459_v10 }
 0x10a   :  { %v779_v15 = vadd.f32 %v778_v13, %v777_v6  ;;  %v699_v18 = vmax.f32 %v465_v9, 0.0  ;;  %v1666_v22 = vpop.f32.mrb[20].mxu1 }
 0x10b   :  { %v698_v19 = vmax.f32 %v460_v14, 0.0  ;;  %v1164_v21 = vpop.f32.mrb[22].mxu0  ;;  %v1669_v28 = vpop.f32.mrb[21].mxu1 }
 0x10c   :  { %v781_v23 = vadd.f32 %v780_v7, %v779_v15  ;;  %v475_v24 = vadd.f32 %v1164_v21, %v1581_v8  ;;  %v469_v26 = vpop.f32.mrb[23].mxu0  ;;  %v784_v34 = vsel %vm742_vm4, %v699_v18, 0.0 }
 0x10d   :  { %v782_v29 = vsel %vm742_vm4, %v698_v19, 0.0  ;;  %v470_v32 = vadd.f32 %v1581_v8, %v469_v26 }
 0x10e   :  { %v783_v33 = vadd.f32 %v782_v29, %v781_v23  ;;  %v701_v35 = vmax.f32 %v475_v24, 0.0  ;;  %v1674_v39 = vpop.f32.mrb[22].mxu1 }
 0x10f   :  { %v700_v36 = vmax.f32 %v470_v32, 0.0  ;;  %v1167_v37 = vpop.f32.mrb[24].mxu0  ;;  %v1677_v46 = vpop.f32.mrb[23].mxu1 }
 0x110   :  { %v785_v41 = vadd.f32 %v784_v34, %v783_v33  ;;  %v485_v43 = vadd.f32 %v1167_v37, %v1581_v8  ;;  %v479_v44 = vpop.f32.mrb[25].mxu0  ;;  %v788_v51 = vsel %vm742_vm4, %v701_v35, 0.0 }
 0x111   :  { %v786_v47 = vsel %vm742_vm4, %v700_v36, 0.0  ;;  %v480_v48 = vadd.f32 %v1581_v8, %v479_v44  ;;  %v530_v44 = vadd.f32 %v1581_v8, %v1589_v20  ;;  %v540_v20 = vadd.f32 %v1581_v8, %v1596_v30 }
 0x112   :  { %v787_v49 = vadd.f32 %v786_v47, %v785_v41  ;;  %v703_v52 = vmax.f32 %v485_v43, 0.0  ;;  %v1682_v57 = vpop.f32.mrb[24].mxu1  ;;  %v550_v30 = vadd.f32 %v1581_v8, %v1604_v42  ;;  %v565_v42 = vadd.f32 %v1609_v50, %v1581_v8 }
 0x113   :  { %v702_v53 = vmax.f32 %v480_v48, 0.0  ;;  %v1170_v56 = vpop.f32.mrb[26].mxu0  ;;  %v1685_v63 = vpop.f32.mrb[25].mxu1  ;;  %v580_v50 = vadd.f32 %v1581_v8, %v1629_v17  ;;  %v595_v17 = vadd.f32 %v1634_v25, %v1581_v8  ;;  %v610_v25 = vadd.f32 %v1581_v8, %v1653_v59 }
 0x114   :  { %v789_v58 = vadd.f32 %v788_v51, %v787_v49  ;;  %v495_v60 = vadd.f32 %v1170_v56, %v1581_v8  ;;  %v489_v61 = vpop.f32.mrb[27].mxu0  ;;  %v792_v4 = vsel %vm742_vm4, %v703_v52, 0.0  ;;  %v625_v59 = vadd.f32 %v1658_v5, %v1581_v8 }
 0x115   :  { %v790_v0 = vsel %vm742_vm4, %v702_v53, 0.0  ;;  %v490_v1 = vadd.f32 %v1581_v8, %v489_v61  ;;  %v640_v5 = vadd.f32 %v1581_v8, %v1677_v46  ;;  %v655_v46 = vadd.f32 %v1682_v57, %v1581_v8 }
 0x116   :  { %v791_v3 = vadd.f32 %v790_v0, %v789_v58  ;;  %v705_v6 = vmax.f32 %v495_v60, 0.0  ;;  %v1690_v13 = vpop.f32.mrb[26].mxu1  ;;  %v535_v60 = vadd.f32 %v1585_v16, %v1581_v8  ;;  %v545_v16 = vadd.f32 %v1593_v27, %v1581_v8 }
 0x117   :  { %v704_v9 = vmax.f32 %v490_v1, 0.0  ;;  %v1173_v10 = vpop.f32.mrb[28].mxu0  ;;  %v1693_v18 = vpop.f32.mrb[27].mxu1  ;;  %v712_v1 = vmax.f32 %v530_v44, 0.0  ;;  %v560_v27 = vadd.f32 %v1581_v8, %v1612_v54 }
 0x118   :  { %v793_v14 = vadd.f32 %v792_v4, %v791_v3  ;;  %v505_v15 = vadd.f32 %v1173_v10, %v1581_v8  ;;  %v499_v7 = vpop.f32.mrb[29].mxu0  ;;  %v796_v24 = vsel %vm742_vm4, %v705_v6, 0.0 }
 0x119   :  { %v794_v19 = vsel %vm742_vm4, %v704_v9, 0.0  ;;  %v500_v21 = vadd.f32 %v1581_v8, %v499_v7 }
 0x11a   :  { %v795_v23 = vadd.f32 %v794_v19, %v793_v14  ;;  %v707_v26 = vmax.f32 %v505_v15, 0.0  ;;  %v1698_v33 = vpop.f32.mrb[28].mxu1  ;;  %v713_v15 = vmax.f32 %v535_v60, 0.0  ;;  %v817_v19 = vsel %vm742_vm4, %v712_v1, 0.0 }
 0x11b   :  { %v706_v29 = vmax.f32 %v500_v21, 0.0  ;;  %v1176_v32 = vpop.f32.mrb[30].mxu0  ;;  %v1701_v37 = vpop.f32.mrb[29].mxu1  ;;  %v714_v21 = vmax.f32 %v540_v20, 0.0 }
 0x11c   :  { %v797_v34 = vadd.f32 %v796_v24, %v795_v23  ;;  %v515_v35 = vadd.f32 %v1176_v32, %v1581_v8  ;;  %v509_v36 = vpop.f32.mrb[31].mxu0  ;;  %v800_v48 = vsel %vm742_vm4, %v707_v26, 0.0  ;;  %v819_v24 = vsel %vm742_vm4, %v713_v15, 0.0 }
 0x11d   :  { %v798_v41 = vsel %vm742_vm4, %v706_v29, 0.0  ;;  %v510_v43 = vadd.f32 %v1581_v8, %v509_v36  ;;  %v555_v29 = vadd.f32 %v1601_v38, %v1581_v8  ;;  %v715_v32 = vmax.f32 %v545_v16, 0.0 }
 0x11e   :  { %v799_v47 = vadd.f32 %v798_v41, %v797_v34  ;;  %v709_v49 = vmax.f32 %v515_v35, 0.0  ;;  %v821_v34 = vsel %vm742_vm4, %v714_v21, 0.0  ;;  %v716_v35 = vmax.f32 %v550_v30, 0.0 }
 0x11f   :  { %v708_v51 = vmax.f32 %v510_v43, 0.0  ;;  %v1179_v52 = vpop.f32.mrb[32].mxu0  ;;  %v717_v43 = vmax.f32 %v555_v29, 0.0  ;;  %v823_v44 = vsel %vm742_vm4, %v715_v32, 0.0  ;;  %v570_v38 = vadd.f32 %v1581_v8, %v1620_v2 }
 0x120   :  { %v801_v53 = vadd.f32 %v800_v48, %v799_v47  ;;  %v525_v56 = vadd.f32 %v1179_v52, %v1581_v8  ;;  %v519_v58 = vpop.f32.mrb[33].mxu0  ;;  %v804_v6 = vsel %vm742_vm4, %v709_v49, 0.0  ;;  %v825_v47 = vsel %vm742_vm4, %v716_v35, 0.0 }
 0x121   :  { %v802_v61 = vsel %vm742_vm4, %v708_v51, 0.0  ;;  %v520_v0 = vadd.f32 %v1581_v8, %v519_v58  ;;  %v718_v48 = vmax.f32 %v560_v27, 0.0  ;;  %v827_v51 = vsel %vm742_vm4, %v717_v43, 0.0 }
 0x122   :  { %v803_v3 = vadd.f32 %v802_v61, %v801_v53  ;;  %v711_v4 = vmax.f32 %v525_v56, 0.0  ;;  %v719_v53 = vmax.f32 %v565_v42, 0.0  ;;  %v575_v56 = vadd.f32 %v1617_v62, %v1581_v8 }
 0x123   :  { %v710_v9 = vmax.f32 %v520_v0, 0.0  ;;  %v829_v54 = vsel %vm742_vm4, %v718_v48, 0.0  ;;  %v720_v58 = vmax.f32 %v570_v38, 0.0  ;;  %v585_v2 = vadd.f32 %v1626_v12, %v1581_v8 }
 0x124   :  { %v1716_v10 = vadd.f32 %v804_v6, %v803_v3  ;;  %v815_v14 = vsel %vm742_vm4, %v711_v4, 0.0  ;;  %v831_v61 = vsel %vm742_vm4, %v719_v53, 0.0  ;;  %v721_v1 = vmax.f32 %v575_v56, 0.0 }
 0x125   :  { %v814_v7 = vsel %vm742_vm4, %v710_v9, 0.0  ;;  %v833_v20 = vsel %vm742_vm4, %v720_v58, 0.0  ;;  %v722_v3 = vmax.f32 %v580_v50, 0.0  ;;  %v590_v4 = vadd.f32 %v1581_v8, %v1637_v31 }
 0x126   :  { %v816_v23 = vadd.f32 %v815_v14, %v814_v7  ;;  %v723_v9 = vmax.f32 %v585_v2, 0.0  ;;  %v835_v14 = vsel %vm742_vm4, %v721_v1, 0.0  ;;  %v600_v12 = vadd.f32 %v1581_v8, %v1645_v45 }
 0x127   :  { %v837_v15 = vsel %vm742_vm4, %v722_v3, 0.0  ;;  %v724_v16 = vmax.f32 %v590_v4, 0.0  ;;  %v725_v30 = vmax.f32 %v595_v17, 0.0  ;;  %v615_v45 = vadd.f32 %v1650_v55, %v1581_v8 }
 0x128   :  { %v818_v26 = vadd.f32 %v817_v19, %v816_v23  ;;  %v839_v19 = vsel %vm742_vm4, %v723_v9, 0.0  ;;  %v605_v23 = vadd.f32 %v1642_v40, %v1581_v8  ;;  %v728_v27 = vmax.f32 %v610_v25, 0.0 }
 0x129   :  { %v841_v31 = vsel %vm742_vm4, %v724_v16, 0.0  ;;  %v843_v29 = vsel %vm742_vm4, %v725_v30, 0.0  ;;  %v729_v43 = vmax.f32 %v615_v45, 0.0  ;;  %v630_v55 = vadd.f32 %v1581_v8, %v1669_v28 }
 0x12a   :  { %v820_v36 = vadd.f32 %v819_v24, %v818_v26  ;;  %v726_v24 = vmax.f32 %v600_v12, 0.0  ;;  %v645_v28 = vadd.f32 %v1674_v39, %v1581_v8  ;;  %v660_v39 = vadd.f32 %v1581_v8, %v1693_v18 }
 0x12b   :  { %v851_v38 = vsel %vm742_vm4, %v729_v43, 0.0  ;;  %v732_v53 = vmax.f32 %v630_v55, 0.0  ;;  %v737_v17 = vmax.f32 %v655_v46, 0.0  ;;  %v670_v57 = vadd.f32 %v1581_v8, %v1701_v37  ;;  %v1049_v55 = vld [vmem:[%s1826_s4] ss:$0 sm:$0xff] }
 0x12c   :  { %v822_v41 = vadd.f32 %v821_v34, %v820_v36  ;;  %v727_v34 = vmax.f32 %v605_v23, 0.0  ;;  %v845_v35 = vsel %vm742_vm4, %v726_v24, 0.0  ;;  %v620_v36 = vadd.f32 %v1581_v8, %v1661_v11 }
 0x12d   :  { %v735_v1 = vmax.f32 %v645_v28, 0.0  ;;  %v806_v12 = vrot.slane %v1716_v10, 4  ;;  %v675_v30 = vadd.f32 %v1698_v33, %v1581_v8 }
 0x12e   :  { %v824_v49 = vadd.f32 %v823_v44, %v822_v41  ;;  %v847_v42 = vsel %vm742_vm4, %v727_v34, 0.0  ;;  %v849_v44 = vsel %vm742_vm4, %v728_v27, 0.0 }
 0x12f   :  { %v741_v37 = vmax.f32 %v675_v30, 0.0 }
 0x130   :  { %v826_v52 = vadd.f32 %v825_v47, %v824_v49  ;;  %v730_v47 = vmax.f32 %v620_v36, 0.0 }
 0x131   :  { %v875_v34 = vsel %vm742_vm4, %v741_v37, 0.0 }
 0x132   :  { %v828_v60 = vadd.f32 %v827_v51, %v826_v52  ;;  %v731_v51 = vmax.f32 %v625_v59, 0.0  ;;  %v853_v11 = vsel %vm742_vm4, %v730_v47, 0.0  ;;  %v635_v52 = vadd.f32 %v1666_v22, %v1581_v8 }
 0x134   :  { %v830_v0 = vadd.f32 %v829_v54, %v828_v60  ;;  %v855_v56 = vsel %vm742_vm4, %v731_v51, 0.0  ;;  %v733_v50 = vmax.f32 %v635_v52, 0.0  ;;  %v857_v60 = vsel %vm742_vm4, %v732_v53, 0.0 }
 0x136   :  { %v832_v6 = vadd.f32 %v831_v61, %v830_v0  ;;  %v734_v61 = vmax.f32 %v640_v5, 0.0  ;;  %v650_v0 = vadd.f32 %v1581_v8, %v1685_v63 }
 0x138   :  { %v834_v62 = vadd.f32 %v833_v20, %v832_v6  ;;  %v859_v20 = vsel %vm742_vm4, %v733_v50, 0.0  ;;  %v861_v3 = vsel %vm742_vm4, %v734_v61, 0.0  ;;  %v736_v4 = vmax.f32 %v650_v0, 0.0 }
 0x13a   :  { %v836_v7 = vadd.f32 %v835_v14, %v834_v62  ;;  %v863_v62 = vsel %vm742_vm4, %v735_v1, 0.0  ;;  %v865_v63 = vsel %vm742_vm4, %v736_v4, 0.0  ;;  %v665_v14 = vadd.f32 %v1690_v13, %v1581_v8 }
 0x13b   :  { %v807_v13 = vadd.f32 %v806_v12, %v1716_v10 }
 0x13c   :  { %v838_v21 = vadd.f32 %v837_v15, %v836_v7  ;;  %v738_v15 = vmax.f32 %v660_v39, 0.0  ;;  %v867_v7 = vsel %vm742_vm4, %v737_v17, 0.0 }
 0x13e   :  { %v840_v26 = vadd.f32 %v839_v19, %v838_v21  ;;  %v739_v19 = vmax.f32 %v665_v14, 0.0  ;;  %v869_v21 = vsel %vm742_vm4, %v738_v15, 0.0 }
 0x140   :  { %v842_v32 = vadd.f32 %v841_v31, %v840_v26  ;;  %v740_v31 = vmax.f32 %v670_v57, 0.0  ;;  %v871_v25 = vsel %vm742_vm4, %v739_v19, 0.0 }
 0x142   :  { %v844_v41 = vadd.f32 %v843_v29, %v842_v32  ;;  %v873_v26 = vsel %vm742_vm4, %v740_v31, 0.0  ;;  %v808_v32 = vrot.slane %v807_v13, 2 }
 0x144   :  { %v846_v40 = vadd.f32 %v845_v35, %v844_v41  ;;  %v809_v27 = vadd.f32 %v808_v32, %v807_v13 }
 0x146   :  { %v848_v48 = vadd.f32 %v847_v42, %v846_v40  ;;  %v810_v8 = vrot.slane %v809_v27, 1 }
 0x148   :  { %v850_v49 = vadd.f32 %v849_v44, %v848_v48  ;;  %v811_v43 = vadd.f32 %v810_v8, %v809_v27 }
 0x14a   :  { %v852_v54 = vadd.f32 %v851_v38, %v850_v49  ;;  %v813_v42 = vmul.f32 0.00390625, %v811_v43 }
 0x14c   :  { %v854_v58 = vadd.f32 %v853_v11, %v852_v54 }
 0x14e   :  { %v856_v2 = vadd.f32 %v855_v56, %v854_v58 }
 0x150   :  { %v858_v22 = vadd.f32 %v857_v60, %v856_v2 }
 0x152   :  { %v860_v6 = vadd.f32 %v859_v20, %v858_v22 }
 0x154   :  { %v862_v9 = vadd.f32 %v861_v3, %v860_v6 }
 0x156   :  { %v864_v16 = vadd.f32 %v863_v62, %v862_v9 }
 0x158   :  { %v866_v18 = vadd.f32 %v865_v63, %v864_v16 }
 0x15a   :  { %v868_v23 = vadd.f32 %v867_v7, %v866_v18 }
 0x15c   :  { %v870_v24 = vadd.f32 %v869_v21, %v868_v23 }
 0x15e   :  { %v872_v29 = vadd.f32 %v871_v25, %v870_v24 }
 0x160   :  { %v874_v45 = vadd.f32 %v873_v26, %v872_v29 }
 0x162   :  { %v876_v35 = vadd.f32 %v875_v34, %v874_v45 }
 0x164   :  { %v877_v36 = vrot.slane %v876_v35, 4 }
 0x166   :  { %v878_v41 = vadd.f32 %v877_v36, %v876_v35 }
 0x168   :  { %v879_v33 = vrot.slane %v878_v41, 2 }
 0x16a   :  { %v880_v40 = vadd.f32 %v879_v33, %v878_v41 }
 0x16c   :  { %v881_v10 = vrot.slane %v880_v40, 1 }
 0x16e   :  { %v882_v59 = vadd.f32 %v881_v10, %v880_v40 }
 0x170   :  { %v883_v44 = vmul.f32 0.00390625, %v882_v59 }
 0x172   :  { %v885_v47 = vsel %vm884_vm6, %v813_v42, %v883_v44 }
 0x173   :  { %1228 = vmatmul.mubr.msk.f32.vlgmr.msra.gmra.mrb[30].mxu1 %vm742_vm4, %v885_v47 }
 0x246   :  { %v963_v48 = vpop.f32.mrb[30].mxu1 }
 0x247   :  { %v964_v38 = vadd.f32 %v1049_v55, %v963_v48  ;;  %v1229_v49 = vpop.f32.mrb[31].mxu1 }
 0x249   :  { %968 = vst.msk [vmem:[#allocation2] sm:$0x3] %vm967_vm7, %v964_v38 }
 0x24a   :  { %1259 = shalt.err (!%p1256_p4)
}
 0x24b   :  { %s1260_s6 = scalar_lea.hbm %s1827_s5, 32 }
 0x24c   :  { %p1261_p5 = scmp.ne.s32.totalorder %s1827_s5, %s1260_s6  ;;  %p1264_p6 = scmp.lt.u32.totalorder %s1260_s6, %s1827_s5 }
 0x24e   :  { %p1266_p7 = pnand %p1264_p6, %p1261_p5 }
 0x250   :  { %1269 = shalt.err (!%p1266_p7)
}
 0x251   :  { %978 = dma.vmem_to_hbm [thread:$0]  %s976_s28, 32, %s1827_s5, [#allocation3]  }
 0x252   :  { %1270 = dma.done.wait [#allocation3], 32  }
 0x253   :  { %1271 = vsyncadd [#allocation3], 4294967264 }
 0x254   :  { %982 = vsyncpa [#allocation3], 1 }

</bundles_post_ra>
